<compile_context>
chip_gen: v6e
topology: v6e:2x2x1
jax: 0.10.0
libtpu: 0.0.40
codegen_flags: <defaults>
</compile_context>

<pallas_src>
import jax
import jax.numpy as jnp
from jax.experimental import pallas as pl
from jax.experimental.pallas import tpu as pltpu

HIDDEN = 128            # fc1 / fc2 width in the PyTorch module
LANE = 128              # TPU lane width (last-dim tiling unit)
SUBLANE = 8             # TPU sublane width (second-to-last tiling unit)
BLOCK_BATCH = 512       # batch rows per grid step (512+ ≈ 85% HBM roofline; fits 16 MiB scoped VMEM on v5e)
ACT_DTYPE = jnp.bfloat16  # MXU-native dtype for x / weights / stored activations


def _round_up(n, m):
    return ((n + m - 1) // m) * m


def _dqn_kernel(x_ref, w1_ref, b1_ref, w2_ref, b2_ref, w3_ref, b3_ref,
                o_ref, h1_ref, h2_ref):
    # fc1 + ReLU: bf16 operands, f32 accumulation, bias/ReLU in f32.
    h1 = jnp.dot(x_ref[...], w1_ref[...], preferred_element_type=jnp.float32)
    h1 = jnp.maximum(h1 + b1_ref[...], 0.0)
    h1_ref[...] = h1.astype(h1_ref.dtype)       # stash activation in VMEM scratch (bf16)

    # fc2 + ReLU
    h2 = jnp.dot(h1_ref[...], w2_ref[...], preferred_element_type=jnp.float32)
    h2 = jnp.maximum(h2 + b2_ref[...], 0.0)
    h2_ref[...] = h2.astype(h2_ref.dtype)

    # fc3 (output lane-padded to 128; sliced back outside the kernel)
    o_ref[...] = (
        jnp.dot(h2_ref[...], w3_ref[...], preferred_element_type=jnp.float32)
        + b3_ref[...]
    ).astype(o_ref.dtype)


@jax.jit
def dqn_forward(x, w1, b1, w2, b2, w3, b3):
    batch, in_dim = x.shape
    out_dim = w3.shape[1]

    # Lane-pad feature dims (a 4-wide output forces masked partial stores).
    in_pad = _round_up(max(in_dim, LANE), LANE)
    out_pad = _round_up(max(out_dim, LANE), LANE)

    # Batch tile: multiple of 8 sublanes, capped at BLOCK_BATCH; pad batch to a multiple.
    tb = min(BLOCK_BATCH, _round_up(batch, SUBLANE))
    batch_pad = _round_up(batch, tb)
    grid = (batch_pad // tb,)

    f32 = jnp.float32
    # One-time wrapper-side padding / casting (weights small; stay VMEM-resident).
    xp = jnp.zeros((batch_pad, in_pad), ACT_DTYPE).at[:batch, :in_dim].set(
        x.astype(ACT_DTYPE))
    w1p = jnp.zeros((in_pad, HIDDEN), ACT_DTYPE).at[:in_dim, :].set(
        w1.astype(ACT_DTYPE))
    w2p = w2.astype(ACT_DTYPE)
    w3p = jnp.zeros((HIDDEN, out_pad), ACT_DTYPE).at[:, :out_dim].set(
        w3.astype(ACT_DTYPE))
    b1p = b1.astype(f32)
    b2p = b2.astype(f32)
    b3p = jnp.zeros((1, out_pad), f32).at[:, :out_dim].set(b3.astype(f32))

    def resident(shape):  # stays in VMEM across all batch tiles
        return pl.BlockSpec(shape, lambda i: (0, 0))

    flops = 2 * batch_pad * (in_pad * HIDDEN + HIDDEN * HIDDEN + HIDDEN * out_pad)
    bytes_accessed = (
        xp.size * 2                                  # bf16 activations in
        + (w1p.size + w2p.size + w3p.size) * 2       # bf16 weights
        + (b1p.size + b2p.size + b3p.size) * 4       # f32 biases
        + batch_pad * out_pad * 4                    # f32 output
    )

    out = pl.pallas_call(
        _dqn_kernel,
        out_shape=jax.ShapeDtypeStruct((batch_pad, out_pad), f32),
        grid=grid,
        in_specs=[
            pl.BlockSpec((tb, in_pad), lambda i: (i, 0)),   # x: tiled over batch
            resident((in_pad, HIDDEN)),                     # w1
            resident((1, HIDDEN)),                          # b1
            resident((HIDDEN, HIDDEN)),                     # w2
            resident((1, HIDDEN)),                          # b2
            resident((HIDDEN, out_pad)),                    # w3
            resident((1, out_pad)),                         # b3
        ],
        out_specs=pl.BlockSpec((tb, out_pad), lambda i: (i, 0)),
        scratch_shapes=[
            pltpu.VMEM((tb, HIDDEN), ACT_DTYPE),            # h1 (post-ReLU)
            pltpu.VMEM((tb, HIDDEN), ACT_DTYPE),            # h2 (post-ReLU)
        ],
        compiler_params=pltpu.CompilerParams(
            dimension_semantics=("parallel",)),             # megacore split on v7x
        cost_estimate=pl.CostEstimate(
            flops=flops, transcendentals=0, bytes_accessed=bytes_accessed),
    )(xp, w1p, b1p, w2p, b2p, w3p, b3p)

    return out[:batch, :out_dim]


def init_params(key, input_dim, output_dim):
    """Deterministic init mimicking PyTorch Linear default (U[-1/sqrt(fan_in), +])."""

    def linear(k, fan_in, fan_out):
        kw, kb = jax.random.split(k)
        bound = 1.0 / jnp.sqrt(fan_in)
        w = jax.random.uniform(kw, (fan_in, fan_out), jnp.float32, -bound, bound)
        b = jax.random.uniform(kb, (1, fan_out), jnp.float32, -bound, bound)
        return w, b

    k1, k2, k3 = jax.random.split(key, 3)
    w1, b1 = linear(k1, input_dim, HIDDEN)
    w2, b2 = linear(k2, HIDDEN, HIDDEN)
    w3, b3 = linear(k3, HIDDEN, output_dim)
    return w1, b1, w2, b2, w3, b3


def reference_forward(x, w1, b1, w2, b2, w3, b3):
    h1 = jnp.maximum(x @ w1 + b1, 0.0)
    h2 = jnp.maximum(h1 @ w2 + b2, 0.0)
    return h2 @ w3 + b3


if __name__ == "__main__":
    input_dim = 16    # e.g. state dimension
    output_dim = 4    # e.g. number of actions
    batch = 37        # ragged batch: exercises sublane padding + output slicing

    key = jax.random.PRNGKey(0)
    k_params, k_x = jax.random.split(key)

    params = init_params(k_params, input_dim, output_dim)
    x = jax.random.normal(k_x, (batch, input_dim), dtype=jnp.float32)

    out = jax.block_until_ready(dqn_forward(x, *params))
    ref = reference_forward(x, *params)

    assert out.shape == (batch, output_dim)
    # bf16 matmuls with f32 accumulation vs. pure-f32 reference -> relaxed tolerance.
    assert jnp.allclose(out, ref, atol=2e-2, rtol=2e-2), "mismatch vs pure-JAX reference"

    print("KERNEL_OK")
</pallas_src>

<mosaic_0001>
module attributes {stable_mosaic.version = 11 : i64} {
  func.func @_dqn_kernel(%arg0: i32, %arg1: memref<40x128xbf16, #tpu.memory_space<vmem>>, %arg2: memref<128x128xbf16, #tpu.memory_space<vmem>>, %arg3: memref<1x128xf32, #tpu.memory_space<vmem>>, %arg4: memref<128x128xbf16, #tpu.memory_space<vmem>>, %arg5: memref<1x128xf32, #tpu.memory_space<vmem>>, %arg6: memref<128x128xbf16, #tpu.memory_space<vmem>>, %arg7: memref<1x128xf32, #tpu.memory_space<vmem>>, %arg8: memref<40x128xf32, #tpu.memory_space<vmem>>, %arg9: memref<40x128xbf16, #tpu.memory_space<vmem>>, %arg10: memref<40x128xbf16, #tpu.memory_space<vmem>>) attributes {dimension_semantics = [#tpu.dimension_semantics<parallel>], iteration_bounds = array<i64: 1>, scalar_prefetch = 0 : i64, scratch_operands = 2 : i64, tpu.core_type = #tpu.core_type<tc>, window_params = [{transform_indices = @transform_0, window_bounds = array<i64: 40, 128>}, {pipeline_mode = #tpu.pipeline_mode<synchronous>, transform_indices = @transform_1, window_bounds = array<i64: 128, 128>}, {pipeline_mode = #tpu.pipeline_mode<synchronous>, transform_indices = @transform_2, window_bounds = array<i64: 1, 128>}, {pipeline_mode = #tpu.pipeline_mode<synchronous>, transform_indices = @transform_3, window_bounds = array<i64: 128, 128>}, {pipeline_mode = #tpu.pipeline_mode<synchronous>, transform_indices = @transform_4, window_bounds = array<i64: 1, 128>}, {pipeline_mode = #tpu.pipeline_mode<synchronous>, transform_indices = @transform_5, window_bounds = array<i64: 128, 128>}, {pipeline_mode = #tpu.pipeline_mode<synchronous>, transform_indices = @transform_6, window_bounds = array<i64: 1, 128>}, {transform_indices = @transform_7, window_bounds = array<i64: 40, 128>}]} {
    %c0 = arith.constant 0 : index
    %c0_0 = arith.constant 0 : index
    %0 = vector.load %arg1[%c0, %c0_0] : memref<40x128xbf16, #tpu.memory_space<vmem>>, vector<40x128xbf16>
    %c0_1 = arith.constant 0 : index
    %c0_2 = arith.constant 0 : index
    %1 = vector.load %arg2[%c0_1, %c0_2] : memref<128x128xbf16, #tpu.memory_space<vmem>>, vector<128x128xbf16>
    %cst = arith.constant dense<0.000000e+00> : vector<40x128xf32>
    %2 = tpu.matmul %0, %1, %cst {dimension_numbers = #tpu.dot_dimension_numbers<[1], [0], [0], [1], [0, 0, 1, 1], [], []>} : vector<40x128xbf16>, vector<128x128xbf16>, vector<40x128xf32> -> vector<40x128xf32>
    %c0_3 = arith.constant 0 : index
    %c0_4 = arith.constant 0 : index
    %3 = vector.load %arg3[%c0_3, %c0_4] : memref<1x128xf32, #tpu.memory_space<vmem>>, vector<1x128xf32>
    %4 = vector.broadcast %3 : vector<1x128xf32> to vector<40x128xf32>
    %5 = arith.addf %2, %4 : vector<40x128xf32>
    %cst_5 = arith.constant 0.000000e+00 : f32
    %6 = vector.broadcast %cst_5 : f32 to vector<40x128xf32>
    %7 = arith.maximumf %5, %6 : vector<40x128xf32>
    %8 = arith.truncf %7 : vector<40x128xf32> to vector<40x128xbf16>
    %c0_6 = arith.constant 0 : index
    %c0_7 = arith.constant 0 : index
    %9 = vector.load %arg9[%c0_6, %c0_7] : memref<40x128xbf16, #tpu.memory_space<vmem>>, vector<40x128xbf16>
    tpu.vector_store %arg9[%c0_6, %c0_7], %8 {strides = array<i32>} : memref<40x128xbf16, #tpu.memory_space<vmem>>, vector<40x128xbf16>,
    %c0_8 = arith.constant 0 : index
    %c0_9 = arith.constant 0 : index
    %10 = vector.load %arg9[%c0_8, %c0_9] : memref<40x128xbf16, #tpu.memory_space<vmem>>, vector<40x128xbf16>
    %c0_10 = arith.constant 0 : index
    %c0_11 = arith.constant 0 : index
    %11 = vector.load %arg4[%c0_10, %c0_11] : memref<128x128xbf16, #tpu.memory_space<vmem>>, vector<128x128xbf16>
    %cst_12 = arith.constant dense<0.000000e+00> : vector<40x128xf32>
    %12 = tpu.matmul %10, %11, %cst_12 {dimension_numbers = #tpu.dot_dimension_numbers<[1], [0], [0], [1], [0, 0, 1, 1], [], []>} : vector<40x128xbf16>, vector<128x128xbf16>, vector<40x128xf32> -> vector<40x128xf32>
    %c0_13 = arith.constant 0 : index
    %c0_14 = arith.constant 0 : index
    %13 = vector.load %arg5[%c0_13, %c0_14] : memref<1x128xf32, #tpu.memory_space<vmem>>, vector<1x128xf32>
    %14 = vector.broadcast %13 : vector<1x128xf32> to vector<40x128xf32>
    %15 = arith.addf %12, %14 : vector<40x128xf32>
    %cst_15 = arith.constant 0.000000e+00 : f32
    %16 = vector.broadcast %cst_15 : f32 to vector<40x128xf32>
    %17 = arith.maximumf %15, %16 : vector<40x128xf32>
    %18 = arith.truncf %17 : vector<40x128xf32> to vector<40x128xbf16>
    %c0_16 = arith.constant 0 : index
    %c0_17 = arith.constant 0 : index
    %19 = vector.load %arg10[%c0_16, %c0_17] : memref<40x128xbf16, #tpu.memory_space<vmem>>, vector<40x128xbf16>
    tpu.vector_store %arg10[%c0_16, %c0_17], %18 {strides = array<i32>} : memref<40x128xbf16, #tpu.memory_space<vmem>>, vector<40x128xbf16>,
    %c0_18 = arith.constant 0 : index
    %c0_19 = arith.constant 0 : index
    %20 = vector.load %arg10[%c0_18, %c0_19] : memref<40x128xbf16, #tpu.memory_space<vmem>>, vector<40x128xbf16>
    %c0_20 = arith.constant 0 : index
    %c0_21 = arith.constant 0 : index
    %21 = vector.load %arg6[%c0_20, %c0_21] : memref<128x128xbf16, #tpu.memory_space<vmem>>, vector<128x128xbf16>
    %cst_22 = arith.constant dense<0.000000e+00> : vector<40x128xf32>
    %22 = tpu.matmul %20, %21, %cst_22 {dimension_numbers = #tpu.dot_dimension_numbers<[1], [0], [0], [1], [0, 0, 1, 1], [], []>} : vector<40x128xbf16>, vector<128x128xbf16>, vector<40x128xf32> -> vector<40x128xf32>
    %c0_23 = arith.constant 0 : index
    %c0_24 = arith.constant 0 : index
    %23 = vector.load %arg7[%c0_23, %c0_24] : memref<1x128xf32, #tpu.memory_space<vmem>>, vector<1x128xf32>
    %24 = vector.broadcast %23 : vector<1x128xf32> to vector<40x128xf32>
    %25 = arith.addf %22, %24 : vector<40x128xf32>
    %c0_25 = arith.constant 0 : index
    %c0_26 = arith.constant 0 : index
    %26 = vector.load %arg8[%c0_25, %c0_26] : memref<40x128xf32, #tpu.memory_space<vmem>>, vector<40x128xf32>
    tpu.vector_store %arg8[%c0_25, %c0_26], %25 {strides = array<i32>} : memref<40x128xf32, #tpu.memory_space<vmem>>, vector<40x128xf32>,
    return
  }
  func.func @transform_0(%arg0: i32) -> (i32, i32) {
    %c0_i32 = arith.constant 0 : i32
    %c0_i32_0 = arith.constant 0 : i32
    return %arg0, %c0_i32 : i32, i32
  }
  func.func @transform_1(%arg0: i32) -> (i32, i32) {
    %c0_i32 = arith.constant 0 : i32
    %c0_i32_0 = arith.constant 0 : i32
    %c0_i32_1 = arith.constant 0 : i32
    return %c0_i32, %c0_i32_0 : i32, i32
  }
  func.func @transform_2(%arg0: i32) -> (i32, i32) {
    %c0_i32 = arith.constant 0 : i32
    %c0_i32_0 = arith.constant 0 : i32
    %c0_i32_1 = arith.constant 0 : i32
    return %c0_i32, %c0_i32_0 : i32, i32
  }
  func.func @transform_3(%arg0: i32) -> (i32, i32) {
    %c0_i32 = arith.constant 0 : i32
    %c0_i32_0 = arith.constant 0 : i32
    %c0_i32_1 = arith.constant 0 : i32
    return %c0_i32, %c0_i32_0 : i32, i32
  }
  func.func @transform_4(%arg0: i32) -> (i32, i32) {
    %c0_i32 = arith.constant 0 : i32
    %c0_i32_0 = arith.constant 0 : i32
    %c0_i32_1 = arith.constant 0 : i32
    return %c0_i32, %c0_i32_0 : i32, i32
  }
  func.func @transform_5(%arg0: i32) -> (i32, i32) {
    %c0_i32 = arith.constant 0 : i32
    %c0_i32_0 = arith.constant 0 : i32
    %c0_i32_1 = arith.constant 0 : i32
    return %c0_i32, %c0_i32_0 : i32, i32
  }
  func.func @transform_6(%arg0: i32) -> (i32, i32) {
    %c0_i32 = arith.constant 0 : i32
    %c0_i32_0 = arith.constant 0 : i32
    %c0_i32_1 = arith.constant 0 : i32
    return %c0_i32, %c0_i32_0 : i32, i32
  }
  func.func @transform_7(%arg0: i32) -> (i32, i32) {
    %c0_i32 = arith.constant 0 : i32
    %c0_i32_0 = arith.constant 0 : i32
    return %arg0, %c0_i32 : i32, i32
  }
}

</mosaic_0001>

<bundles_post_ra>
// kernel: dqn_forward.1
= control target key start
LH: loop header
LB: loop body
LE: loop exit
PB: predicated region body
PF: predicated region fallthrough
CT: control target
= control target key end

     0   :  { %v788_v0 = vmov 0.0   ;;  %vm789_vm0 = vmmov 0   ;;  %s985_s1 = inlined_call_operand.vmem [shape: bf16[128,128], index: 1, kind: input, shape index: {}]   ;;  %s986_s0 = inlined_call_operand.vmem [shape: bf16[40,128], index: 0, kind: input, shape index: {}]   ;;  %s987_s3 = inlined_call_operand.vmem [shape: bf16[128,128], index: 3, kind: input, shape index: {}]   ;;  %s988_s5 = inlined_call_operand.vmem [shape: bf16[128,128], index: 5, kind: input, shape index: {}]   ;;  %s989_s2 = inlined_call_operand.vmem [shape: f32[1,128], index: 2, kind: input, shape index: {}]   ;;  %s990_s4 = inlined_call_operand.vmem [shape: f32[1,128], index: 4, kind: input, shape index: {}]   ;;  %s991_s6 = inlined_call_operand.vmem [shape: f32[1,128], index: 6, kind: input, shape index: {}]   ;;  %s992_s7 = inlined_call_operand.vmem [shape: f32[40,128], index: 7, kind: output, shape index: {}]  }
   0x1   :  { %653 = vmatprep.subr.bf16.mxu0 %v788_v0  ;;  %v755_v1 = vld [vmem:[%s985_s1 + $0x38] sm:$0xff]   ;;  %669 = vmatprep.mubr.msk.bf16.mxu0 %vm789_vm0, %v788_v0  ;;  %v756_v2 = vld [vmem:[%s985_s1 + $0x30] sm:$0xff]   ;;  %v757_v3 = vld [vmem:[%s985_s1 + $0x28] sm:$0xff]  }
   0x2   :  { %681 = vmatprep.subr.bf16.mxu1 %v788_v0  ;;  %697 = vmatprep.mubr.msk.bf16.mxu1 %vm789_vm0, %v788_v0  ;;  %v758_v4 = vld [vmem:[%s985_s1 + $0x20] sm:$0xff]   ;;  %v766_v5 = vld [vmem:[%s987_s3 + $0x38] sm:$0xff]   ;;  %v767_v7 = vld [vmem:[%s987_s3 + $0x30] sm:$0xff]  }
   0x3   :  { %654 = vmatpush3.bf16.msra.mxu0 %v755_v1  ;;  %v759_v6 = vld [vmem:[%s985_s1 + $0x18] sm:$0xff]   ;;  %682 = vmatpush3.bf16.msra.mxu1 %v766_v5  ;;  %v768_v8 = vld [vmem:[%s987_s3 + $0x28] sm:$0xff]   ;;  %v760_v9 = vld [vmem:[%s985_s1 + $0x10] sm:$0xff]  }
   0x4   :  { %655 = vmatprep.subr.bf16.mxu0 %v788_v0  ;;  %683 = vmatprep.subr.bf16.mxu1 %v788_v0  ;;  %v761_v10 = vld [vmem:[%s985_s1 + $0x8] sm:$0xff]   ;;  %v762_v11 = vld [vmem:[%s985_s1] sm:$0xff]   ;;  %v765_v14 = vld [vmem:[%s986_s0 + $0x10] ss:$0 sps:$4 sm:$0xff]  }
   0x5   :  { %v763_v12 = vld [vmem:[%s986_s0] sm:$0xff]   ;;  %v764_v13 = vld [vmem:[%s986_s0 + $0x8] sm:$0xff]   ;;  %v770_v16 = vld [vmem:[%s987_s3 + $0x18] sm:$0xff]  }
   0x6   :  { %v769_v15 = vld [vmem:[%s987_s3 + $0x20] sm:$0xff]   ;;  %v771_v17 = vld [vmem:[%s987_s3 + $0x10] sm:$0xff]   ;;  %v772_v18 = vld [vmem:[%s987_s3 + $0x8] sm:$0xff]  }
   0x7   :  { %656 = vmatpush3.bf16.msra.mxu0 %v756_v2  ;;  %684 = vmatpush3.bf16.msra.mxu1 %v767_v7  ;;  %v773_v19 = vld [vmem:[%s987_s3] sm:$0xff]   ;;  %v777_v20 = vld [vmem:[%s988_s5 + $0x38] sm:$0xff]   ;;  %v778_v21 = vld [vmem:[%s988_s5 + $0x30] sm:$0xff]  }
   0x8   :  { %657 = vmatprep.subr.bf16.mxu0 %v788_v0  ;;  %685 = vmatprep.subr.bf16.mxu1 %v788_v0  ;;  %v779_v22 = vld [vmem:[%s988_s5 + $0x28] sm:$0xff]   ;;  %v542_v23 = vld [vmem:[%s989_s2] ss:$0 sm:$0xff]  ;;  %v781_v53 = vld [vmem:[%s988_s5 + $0x18] sm:$0xff]  }
   0x9   :  { %v780_v52 = vld [vmem:[%s988_s5 + $0x20] sm:$0xff]   ;;  %v782_v54 = vld [vmem:[%s988_s5 + $0x10] sm:$0xff]   ;;  %v783_v55 = vld [vmem:[%s988_s5 + $0x8] sm:$0xff]  }
   0xa   :  { %v784_v56 = vld [vmem:[%s988_s5] sm:$0xff]  }
   0xb   :  { %658 = vmatpush3.bf16.msra.mxu0 %v757_v3  ;;  %686 = vmatpush3.bf16.msra.mxu1 %v768_v8  ;;  %v559_v57 = vld [vmem:[%s990_s4] ss:$0 sm:$0xff] }
   0xc   :  { %659 = vmatprep.subr.bf16.mxu0 %v788_v0  ;;  %687 = vmatprep.subr.bf16.mxu1 %v788_v0 }
   0xf   :  { %660 = vmatpush3.bf16.msra.mxu0 %v758_v4  ;;  %688 = vmatpush3.bf16.msra.mxu1 %v769_v15 }
  0x10   :  { %661 = vmatprep.subr.bf16.mxu0 %v788_v0  ;;  %689 = vmatprep.subr.bf16.mxu1 %v788_v0 }
  0x13   :  { %662 = vmatpush3.bf16.msra.mxu0 %v759_v6  ;;  %690 = vmatpush3.bf16.msra.mxu1 %v770_v16 }
  0x14   :  { %663 = vmatprep.subr.bf16.mxu0 %v788_v0  ;;  %691 = vmatprep.subr.bf16.mxu1 %v788_v0 }
  0x17   :  { %664 = vmatpush3.bf16.msra.mxu0 %v760_v9  ;;  %692 = vmatpush3.bf16.msra.mxu1 %v771_v17 }
  0x18   :  { %665 = vmatprep.subr.bf16.mxu0 %v788_v0  ;;  %693 = vmatprep.subr.bf16.mxu1 %v788_v0 }
  0x1b   :  { %666 = vmatpush3.bf16.msra.mxu0 %v761_v10  ;;  %694 = vmatpush3.bf16.msra.mxu1 %v772_v18 }
  0x1c   :  { %667 = vmatprep.subr.bf16.mxu0 %v788_v0  ;;  %695 = vmatprep.subr.bf16.mxu1 %v788_v0 }
  0x1f   :  { %668 = vmatpush3.bf16.msra.mxu0 %v762_v11  ;;  %696 = vmatpush3.bf16.msra.mxu1 %v773_v19 }
  0x20   :  { %709 = vmatprep.subr.bf16.mxu0 %v788_v0  ;;  %737 = vmatprep.subr.bf16.mxu1 %v788_v0 }
  0x22   :  { %670 = vmatmul.mubr.bf16.vlgmr.msra.gmra.mxu0 %v763_v12 }
  0x23   :  { %673 = vmatprep.mubr.msk.bf16.mxu0 %vm789_vm0, %v788_v0  ;;  %710 = vmatpush3.bf16.msra.mxu0 %v777_v20 }
  0x24   :  { %711 = vmatprep.subr.bf16.mxu0 %v788_v0 }
  0x27   :  { %712 = vmatpush3.bf16.msra.mxu0 %v778_v21 }
  0x28   :  { %713 = vmatprep.subr.bf16.mxu0 %v788_v0 }
  0x2a   :  { %674 = vmatmul.mubr.bf16.gmra.mxu0 %v764_v13 }
  0x2b   :  { %677 = vmatprep.mubr.msk.bf16.mxu0 %vm789_vm0, %v788_v0  ;;  %714 = vmatpush3.bf16.msra.mxu0 %v779_v22 }
  0x2c   :  { %715 = vmatprep.subr.bf16.mxu0 %v788_v0 }
  0x2f   :  { %716 = vmatpush3.bf16.msra.mxu0 %v780_v52 }
  0x30   :  { %717 = vmatprep.subr.bf16.mxu0 %v788_v0 }
  0x32   :  { %678 = vmatmul.mubr.bf16.gmra.mxu0 %v765_v14 }
  0x33   :  { %725 = vmatprep.mubr.msk.bf16.mxu0 %vm789_vm0, %v788_v0  ;;  %718 = vmatpush3.bf16.msra.mxu0 %v781_v53 }
  0x34   :  { %719 = vmatprep.subr.bf16.mxu0 %v788_v0 }
  0x37   :  { %720 = vmatpush3.bf16.msra.mxu0 %v782_v54 }
  0x38   :  { %721 = vmatprep.subr.bf16.mxu0 %v788_v0 }
  0x3b   :  { %722 = vmatpush3.bf16.msra.mxu0 %v783_v55 }
  0x3c   :  { %723 = vmatprep.subr.bf16.mxu0 %v788_v0 }
  0x3f   :  { %724 = vmatpush3.bf16.msra.mxu0 %v784_v56 }
  0xe2   :  { %v153_v24 = vpop.f32.mrf.mxu0 }
  0xe3   :  { %v154_v26 = vadd.f32 %v542_v23, %v153_v24 }
  0xe4   :  { %v671_v25 = vpop.f32.mrf.mxu0 }
  0xe5   :  { %v175_v30 = vmax.f32 %v154_v26, 0.0 }
  0xe6   :  { %v156_v27 = vpop.f32.mrf.mxu0 }
  0xe7   :  { %v157_v28 = vadd.f32 %v542_v23, %v156_v27 }
  0xe8   :  { %v672_v29 = vpop.f32.mrf.mxu0 }
  0xe9   :  { %v176_v31 = vmax.f32 %v157_v28, 0.0 }
  0xea   :  { %v161_v32 = vpop.f32.mrf.mxu0 }
  0xeb   :  { %v601_v33 = vpack.c.bf16 %v176_v31, %v175_v30  ;;  %v162_v35 = vadd.f32 %v542_v23, %v161_v32 }
  0xec   :  { %v675_v34 = vpop.f32.mrf.mxu0 }
  0xed   :  { %602 = vst [vmem:[#allocation2] sm:$0xff] %v601_v33   ;;  %v177_v39 = vmax.f32 %v162_v35, 0.0 }
  0xee   :  { %v164_v36 = vpop.f32.mrf.mxu0 }
  0xef   :  { %v165_v37 = vadd.f32 %v542_v23, %v164_v36 }
  0xf0   :  { %v676_v38 = vpop.f32.mrf.mxu0 }
  0xf1   :  { %v178_v40 = vmax.f32 %v165_v37, 0.0 }
  0xf2   :  { %v169_v41 = vpop.f32.mrf.mxu0 }
  0xf3   :  { %v606_v42 = vpack.c.bf16 %v178_v40, %v177_v39  ;;  %v170_v43 = vadd.f32 %v542_v23, %v169_v41  ;;  %v576_v23 = vld [vmem:[%s991_s6] ss:$0 sm:$0xff] }
  0xf4   :  { %v679_v44 = vpop.f32.mrf.mxu0  ;;  %v774_v45 = vld [vmem:[#allocation2] sm:$0xff]  }
  0xf5   :  { %618 = vst [vmem:[#allocation2 + $0x8] sm:$0xff] %v606_v42   ;;  %v179_v46 = vmax.f32 %v170_v43, 0.0  ;;  %698 = vmatmul.mubr.bf16.vlgmr.msra.gmra.mxu1 %v774_v45 }
  0xf6   :  { %v172_v47 = vpop.f32.mrf.mxu0  ;;  %701 = vmatprep.mubr.msk.bf16.mxu1 %vm789_vm0, %v788_v0  ;;  %745 = vmatpush3.bf16.msra.mxu1 %v777_v20 }
  0xf7   :  { %v592_v48 = vpack.c.bf16 %v179_v46, %v179_v46  ;;  %738 = vmatprep.subr.bf16.mxu1 %v788_v0 }
  0xf8   :  { %v680_v49 = vpop.f32.mrf.mxu0 }
  0xf9   :  { %205 = vst [vmem:[#allocation2 + $0x10] sm:$0xf] %v592_v48 }
  0xfa   :  { %746 = vmatpush3.bf16.msra.mxu1 %v778_v21 }
  0xfb   :  { %739 = vmatprep.subr.bf16.mxu1 %v788_v0 }
  0xfc   :  { %v775_v50 = vld [vmem:[#allocation2 + $0x8] sm:$0xff]  }
  0xfd   :  { %702 = vmatmul.mubr.bf16.gmra.mxu1 %v775_v50 }
  0xfe   :  { %705 = vmatprep.mubr.msk.bf16.mxu1 %vm789_vm0, %v788_v0  ;;  %747 = vmatpush3.bf16.msra.mxu1 %v779_v22 }
  0xff   :  { %740 = vmatprep.subr.bf16.mxu1 %v788_v0 }
 0x100   :  { %v776_v51 = vld [vmem:[#allocation2 + $0x10] ss:$0 sps:$4 sm:$0xff]  }
 0x102   :  { %748 = vmatpush3.bf16.msra.mxu1 %v780_v52 }
 0x103   :  { %741 = vmatprep.subr.bf16.mxu1 %v788_v0 }
 0x105   :  { %706 = vmatmul.mubr.bf16.gmra.mxu1 %v776_v51 }
 0x106   :  { %729 = vmatprep.mubr.msk.bf16.mxu1 %vm789_vm0, %v788_v0  ;;  %749 = vmatpush3.bf16.msra.mxu1 %v781_v53 }
 0x107   :  { %742 = vmatprep.subr.bf16.mxu1 %v788_v0 }
 0x10a   :  { %750 = vmatpush3.bf16.msra.mxu1 %v782_v54 }
 0x10b   :  { %743 = vmatprep.subr.bf16.mxu1 %v788_v0 }
 0x10e   :  { %751 = vmatpush3.bf16.msra.mxu1 %v783_v55 }
 0x10f   :  { %744 = vmatprep.subr.bf16.mxu1 %v788_v0 }
 0x112   :  { %752 = vmatpush3.bf16.msra.mxu1 %v784_v56 }
 0x1b5   :  { %v332_v58 = vpop.f32.mrf.mxu1 }
 0x1b6   :  { %v333_v60 = vadd.f32 %v559_v57, %v332_v58 }
 0x1b7   :  { %v699_v59 = vpop.f32.mrf.mxu1 }
 0x1b8   :  { %v354_v1 = vmax.f32 %v333_v60, 0.0 }
 0x1b9   :  { %v335_v61 = vpop.f32.mrf.mxu1 }
 0x1ba   :  { %v336_v62 = vadd.f32 %v559_v57, %v335_v61 }
 0x1bb   :  { %v700_v63 = vpop.f32.mrf.mxu1 }
 0x1bc   :  { %v355_v2 = vmax.f32 %v336_v62, 0.0 }
 0x1bd   :  { %v340_v3 = vpop.f32.mrf.mxu1 }
 0x1be   :  { %v611_v4 = vpack.c.bf16 %v355_v2, %v354_v1  ;;  %v341_v6 = vadd.f32 %v559_v57, %v340_v3 }
 0x1bf   :  { %v703_v5 = vpop.f32.mrf.mxu1 }
 0x1c0   :  { %612 = vst [vmem:[#allocation3] sm:$0xff] %v611_v4   ;;  %v356_v10 = vmax.f32 %v341_v6, 0.0 }
 0x1c1   :  { %v343_v7 = vpop.f32.mrf.mxu1 }
 0x1c2   :  { %v344_v8 = vadd.f32 %v559_v57, %v343_v7 }
 0x1c3   :  { %v704_v9 = vpop.f32.mrf.mxu1 }
 0x1c4   :  { %v357_v11 = vmax.f32 %v344_v8, 0.0 }
 0x1c5   :  { %v348_v12 = vpop.f32.mrf.mxu1 }
 0x1c6   :  { %v616_v13 = vpack.c.bf16 %v357_v11, %v356_v10  ;;  %v349_v14 = vadd.f32 %v559_v57, %v348_v12 }
 0x1c7   :  { %v707_v15 = vpop.f32.mrf.mxu1  ;;  %v785_v16 = vld [vmem:[#allocation3] sm:$0xff]  }
 0x1c8   :  { %619 = vst [vmem:[#allocation3 + $0x8] sm:$0xff] %v616_v13   ;;  %v358_v17 = vmax.f32 %v349_v14, 0.0  ;;  %726 = vmatmul.mubr.bf16.vlgmr.msra.gmra.mxu0 %v785_v16 }
 0x1c9   :  { %v351_v18 = vpop.f32.mrf.mxu1 }
 0x1ca   :  { %v597_v19 = vpack.c.bf16 %v358_v17, %v358_v17 }
 0x1cb   :  { %v708_v20 = vpop.f32.mrf.mxu1 }
 0x1cc   :  { %384 = vst [vmem:[#allocation3 + $0x10] sm:$0xf] %v597_v19 }
 0x1cf   :  { %v786_v21 = vld [vmem:[#allocation3 + $0x8] sm:$0xff]  }
 0x1d0   :  { %730 = vmatmul.mubr.bf16.vlgmr.msra.gmra.mxu1 %v786_v21 }
 0x1d1   :  { %733 = vmatprep.mubr.msk.bf16.mxu1 %vm789_vm0, %v788_v0 }
 0x1d3   :  { %v787_v22 = vld [vmem:[#allocation3 + $0x10] ss:$0 sps:$4 sm:$0xff]  }
 0x1d8   :  { %734 = vmatmul.mubr.bf16.gmra.mxu1 %v787_v22 }
 0x288   :  { %v511_v24 = vpop.f32.mrf.mxu0 }
 0x289   :  { %v512_v25 = vadd.f32 %v576_v23, %v511_v24 }
 0x28a   :  { %v727_v26 = vpop.f32.mrf.mxu0 }
 0x28b   :  { %533 = vst [vmem:[%s992_s7] sm:$0xff] %v512_v25 }
 0x28c   :  { %v514_v27 = vpop.f32.mrf.mxu0 }
 0x28d   :  { %v515_v28 = vadd.f32 %v576_v23, %v514_v27 }
 0x28e   :  { %v728_v29 = vpop.f32.mrf.mxu0 }
 0x28f   :  { %534 = vst [vmem:[%s992_s7 + $0x8] sm:$0xff] %v515_v28 }
 0x290   :  { %v519_v0 = vpop.f32.mrf.mxu1 }
 0x291   :  { %v520_v30 = vadd.f32 %v576_v23, %v519_v0 }
 0x292   :  { %v731_v31 = vpop.f32.mrf.mxu1 }
 0x293   :  { %535 = vst [vmem:[%s992_s7 + $0x10] sm:$0xff] %v520_v30 }
 0x294   :  { %v522_v32 = vpop.f32.mrf.mxu1 }
 0x295   :  { %v523_v33 = vadd.f32 %v576_v23, %v522_v32 }
 0x296   :  { %v732_v34 = vpop.f32.mrf.mxu1 }
 0x297   :  { %536 = vst [vmem:[%s992_s7 + $0x18] sm:$0xff] %v523_v33 }
 0x298   :  { %v527_v35 = vpop.f32.mrf.mxu1 }
 0x299   :  { %v528_v36 = vadd.f32 %v576_v23, %v527_v35 }
 0x29a   :  { %v735_v37 = vpop.f32.mrf.mxu1 }
 0x29b   :  { %537 = vst [vmem:[%s992_s7 + $0x20] sm:$0xff] %v528_v36 }
 0x29c   :  { %v530_v38 = vpop.f32.mrf.mxu1 }
 0x29e   :  { %v736_v39 = vpop.f32.mrf.mxu1 }

</bundles_post_ra>
